<compile_context>
chip_gen: v5e
topology: v5e:2x2
jax: 0.10.0
libtpu: 0.0.40
codegen_flags: <defaults>
</compile_context>

<pallas_src>
import numpy as np
import jax
import jax.numpy as jnp
from jax.experimental import pallas as pl
from jax.experimental.pallas import tpu as pltpu


# ----------------------------------------------------------------------------
# Kernel: 4-layer MLP (bf16 MXU operands, f32 accumulate/VPU) + control select.
# ----------------------------------------------------------------------------
def _encoder_kernel(x_ref, cmask_ref,
                    w1_ref, b1_ref, w2_ref, b2_ref,
                    w3_ref, b3_ref, w4_ref, b4_ref, o_ref):
    h = jnp.dot(x_ref[...].astype(jnp.bfloat16), w1_ref[...],
                preferred_element_type=jnp.float32)
    h = jnp.maximum(h + b1_ref[...], 0.0)
    h = jnp.dot(h.astype(jnp.bfloat16), w2_ref[...],
                preferred_element_type=jnp.float32)
    h = jnp.maximum(h + b2_ref[...], 0.0)
    h = jnp.dot(h.astype(jnp.bfloat16), w3_ref[...],
                preferred_element_type=jnp.float32)
    h = jnp.maximum(h + b3_ref[...], 0.0)
    out = jnp.dot(h.astype(jnp.bfloat16), w4_ref[...],
                  preferred_element_type=jnp.float32) + b4_ref[...]
    # Control positions pass x (f32, exact) through; others take the MLP out.
    # Re-read x from its VMEM block so the f32 tile is not live across the dots.
    o_ref[...] = jnp.where(cmask_ref[...] != 0.0, x_ref[...], out
                           ).astype(o_ref.dtype)


# ----------------------------------------------------------------------------
# Static (host-side) parameter folding & padding.
# ----------------------------------------------------------------------------
def _round_up(n, m):
    return ((n + m - 1) // m) * m


def make_encoder_params(key, nxny, M, hidden_dim, P):
    """nn.Linear-style init; weights stored as (in_features, out_features)."""
    dims = [nxny - M, hidden_dim, hidden_dim, hidden_dim, P - M]
    params = []
    for i in range(4):
        fan_in, fan_out = dims[i], dims[i + 1]
        key, kw, kb = jax.random.split(key, 3)
        bound = 1.0 / np.sqrt(fan_in)
        w = jax.random.uniform(kw, (fan_in, fan_out), jnp.float32, -bound, bound)
        b = jax.random.uniform(kb, (fan_out,), jnp.float32, -bound, bound)
        params.append((w, b))
    return params


def fold_encoder_params(params, nxny, M, P, control_indices, hidden_dim):
    """Fold the static index selection into hidden-padded weights.

    Returns (cmask, W1, b1, W2, b2, W3, b3, W4, b4); weights are bf16 (MXU
    operands), biases/cmask are f32 (VPU ops).  Hidden dim is padded to 128;
    padded rows of W2/W3/W4 are zero so padded hidden lanes never propagate,
    and W1's control rows are zero so control lanes never feed the MLP.
    """
    assert P == nxny, "PyTorch boolean-mask assignment into y requires P == nxny"
    ci = np.asarray(control_indices, dtype=np.int64)
    mask = np.ones(nxny, dtype=bool)
    mask[ci] = False
    non_control = np.nonzero(mask)[0]                 # sorted, len = nxny - M

    (w1, b1), (w2, b2), (w3, b3), (w4, b4) = [
        (np.asarray(w, np.float32), np.asarray(b, np.float32)) for w, b in params]

    h_pad = _round_up(hidden_dim, 128)

    W1 = np.zeros((nxny, h_pad), np.float32)
    W1[non_control, :w1.shape[1]] = w1                # zero rows at control idx
    B1 = np.zeros((1, h_pad), np.float32)
    B1[0, :b1.shape[0]] = b1

    W2 = np.zeros((h_pad, h_pad), np.float32)
    W2[:w2.shape[0], :w2.shape[1]] = w2
    B2 = np.zeros((1, h_pad), np.float32)
    B2[0, :b2.shape[0]] = b2

    W3 = np.zeros((h_pad, h_pad), np.float32)
    W3[:w3.shape[0], :w3.shape[1]] = w3
    B3 = np.zeros((1, h_pad), np.float32)
    B3[0, :b3.shape[0]] = b3

    W4 = np.zeros((h_pad, P), np.float32)
    W4[:w4.shape[0], non_control] = w4                # scatter cols -> non-control
    B4 = np.zeros((1, P), np.float32)
    B4[0, non_control] = b4

    cmask = np.zeros((1, P), np.float32)
    cmask[0, ci] = 1.0                                # 1 -> pass-through x

    bf = jnp.bfloat16
    return (jnp.asarray(cmask),
            jnp.asarray(W1, bf), jnp.asarray(B1),
            jnp.asarray(W2, bf), jnp.asarray(B2),
            jnp.asarray(W3, bf), jnp.asarray(B3),
            jnp.asarray(W4, bf), jnp.asarray(B4))


# ----------------------------------------------------------------------------
# Batch tiling: no padding for small batches; 128-multiples for large ones.
# ----------------------------------------------------------------------------
def _batch_tiling(B):
    if B <= 128:
        # Single full-extent tile (legal block even if B is not a multiple of 8).
        return B, 1
    # Tile in 128-row multiples (MXU M-dim aligned), cap 512; pick the
    # candidate with the least last-tile waste (ties -> bigger tile).  >= 2
    # grid steps lets dimension_semantics=("parallel",) shard across v7x's
    # two TensorCores; the extra ~0.35 us per step is negligible at this size.
    best_tb, best_waste = None, None
    for tb in (512, 384, 256, 128):
        waste = (-B) % tb
        if best_waste is None or waste < best_waste:
            best_tb, best_waste = tb, waste
    return best_tb, pl.cdiv(B, best_tb)


# ----------------------------------------------------------------------------
# Wrapper: single lane-dense Pallas call, no wrapper-side pad/slice.
# ----------------------------------------------------------------------------
def encoder_forward(x, folded, nxny, P):
    cmask, W1, B1, W2, B2, W3, B3, W4, B4 = folded
    out_dtype = x.dtype
    x = x.astype(jnp.float32)
    B = x.shape[0]
    h_pad = W1.shape[1]

    tb, n_tiles = _batch_tiling(B)
    grid = (n_tiles,)

    const = lambda i: (0, 0)                           # weights stay resident
    y = pl.pallas_call(
        _encoder_kernel,
        out_shape=jax.ShapeDtypeStruct((B, P), jnp.float32),
        grid=grid,
        in_specs=[
            pl.BlockSpec((tb, nxny), lambda i: (i, 0)),    # x (unpadded)
            pl.BlockSpec((1, P), const),                   # control mask
            pl.BlockSpec((nxny, h_pad), const),            # W1 (bf16)
            pl.BlockSpec((1, h_pad), const),               # b1
            pl.BlockSpec((h_pad, h_pad), const),           # W2 (bf16)
            pl.BlockSpec((1, h_pad), const),               # b2
            pl.BlockSpec((h_pad, h_pad), const),           # W3 (bf16)
            pl.BlockSpec((1, h_pad), const),               # b3
            pl.BlockSpec((h_pad, P), const),               # W4 (bf16)
            pl.BlockSpec((1, P), const),                   # b4
        ],
        out_specs=pl.BlockSpec((tb, P), lambda i: (i, 0)),
        compiler_params=pltpu.CompilerParams(
            dimension_semantics=("parallel",)),
    )(x, cmask, W1, B1, W2, B2, W3, B3, W4, B4)

    return y.astype(out_dtype)


# ----------------------------------------------------------------------------
# Pure-JAX reference (mirrors the PyTorch forward with the ORIGINAL f32 params).
# ----------------------------------------------------------------------------
def encoder_forward_ref(x, params, nxny, M, P, control_indices):
    ci = np.asarray(control_indices, dtype=np.int64)
    mask = np.ones(nxny, dtype=bool)
    mask[ci] = False
    non_control = np.nonzero(mask)[0]

    h = x[:, non_control]
    (w1, b1), (w2, b2), (w3, b3), (w4, b4) = params
    h = jnp.maximum(h @ w1 + b1, 0.0)
    h = jnp.maximum(h @ w2 + b2, 0.0)
    h = jnp.maximum(h @ w3 + b3, 0.0)
    out = h @ w4 + b4

    y = jnp.zeros((x.shape[0], P), dtype=x.dtype)
    y = y.at[:, ci].set(x[:, ci])
    y = y.at[:, non_control].set(out.astype(x.dtype))
    return y


if __name__ == "__main__":
    # Small, deterministic configuration consistent with the module.
    batch = 4
    nxny = 72           # total grid points
    M = 8               # number of control indices
    P = nxny            # required by the PyTorch boolean-mask write into y
    hidden_dim = 32

    control_indices = np.arange(M) * (nxny // M)   # static, evenly spaced

    key = jax.random.PRNGKey(0)
    key, kx = jax.random.split(key)
    x = jax.random.normal(kx, (batch, nxny), jnp.float32)

    params = make_encoder_params(key, nxny, M, hidden_dim, P)
    folded = fold_encoder_params(params, nxny, M, P, control_indices, hidden_dim)

    y = encoder_forward(x, folded, nxny, P)
    y = jax.block_until_ready(y)

    y_ref = encoder_forward_ref(x, params, nxny, M, P, control_indices)
    # bf16 MXU operands (f32 accumulation) vs. f32 reference -> loosened tol.
    np.testing.assert_allclose(np.asarray(y), np.asarray(y_ref),
                               rtol=2e-2, atol=2e-2)

    print("KERNEL_OK")
</pallas_src>

<mosaic_0001>
module attributes {stable_mosaic.version = 11 : i64} {
  func.func @_encoder_kernel(%arg0: i32, %arg1: memref<4x72xf32, #tpu.memory_space<vmem>>, %arg2: memref<1x72xf32, #tpu.memory_space<vmem>>, %arg3: memref<72x128xbf16, #tpu.memory_space<vmem>>, %arg4: memref<1x128xf32, #tpu.memory_space<vmem>>, %arg5: memref<128x128xbf16, #tpu.memory_space<vmem>>, %arg6: memref<1x128xf32, #tpu.memory_space<vmem>>, %arg7: memref<128x128xbf16, #tpu.memory_space<vmem>>, %arg8: memref<1x128xf32, #tpu.memory_space<vmem>>, %arg9: memref<128x72xbf16, #tpu.memory_space<vmem>>, %arg10: memref<1x72xf32, #tpu.memory_space<vmem>>, %arg11: memref<4x72xf32, #tpu.memory_space<vmem>>) attributes {dimension_semantics = [#tpu.dimension_semantics<parallel>], iteration_bounds = array<i64: 1>, scalar_prefetch = 0 : i64, scratch_operands = 0 : i64, tpu.core_type = #tpu.core_type<tc>, window_params = [{transform_indices = @transform_0, window_bounds = array<i64: 4, 72>}, {pipeline_mode = #tpu.pipeline_mode<synchronous>, transform_indices = @transform_1, window_bounds = array<i64: 1, 72>}, {pipeline_mode = #tpu.pipeline_mode<synchronous>, transform_indices = @transform_2, window_bounds = array<i64: 72, 128>}, {pipeline_mode = #tpu.pipeline_mode<synchronous>, transform_indices = @transform_3, window_bounds = array<i64: 1, 128>}, {pipeline_mode = #tpu.pipeline_mode<synchronous>, transform_indices = @transform_4, window_bounds = array<i64: 128, 128>}, {pipeline_mode = #tpu.pipeline_mode<synchronous>, transform_indices = @transform_5, window_bounds = array<i64: 1, 128>}, {pipeline_mode = #tpu.pipeline_mode<synchronous>, transform_indices = @transform_6, window_bounds = array<i64: 128, 128>}, {pipeline_mode = #tpu.pipeline_mode<synchronous>, transform_indices = @transform_7, window_bounds = array<i64: 1, 128>}, {pipeline_mode = #tpu.pipeline_mode<synchronous>, transform_indices = @transform_8, window_bounds = array<i64: 128, 72>}, {pipeline_mode = #tpu.pipeline_mode<synchronous>, transform_indices = @transform_9, window_bounds = array<i64: 1, 72>}, {transform_indices = @transform_10, window_bounds = array<i64: 4, 72>}]} {
    %c0 = arith.constant 0 : index
    %c0_0 = arith.constant 0 : index
    %0 = vector.load %arg1[%c0, %c0_0] : memref<4x72xf32, #tpu.memory_space<vmem>>, vector<4x72xf32>
    %1 = arith.truncf %0 : vector<4x72xf32> to vector<4x72xbf16>
    %c0_1 = arith.constant 0 : index
    %c0_2 = arith.constant 0 : index
    %2 = vector.load %arg3[%c0_1, %c0_2] : memref<72x128xbf16, #tpu.memory_space<vmem>>, vector<72x128xbf16>
    %cst = arith.constant dense<0.000000e+00> : vector<4x128xf32>
    %3 = tpu.matmul %1, %2, %cst {dimension_numbers = #tpu.dot_dimension_numbers<[1], [0], [0], [1], [0, 0, 1, 1], [], []>} : vector<4x72xbf16>, vector<72x128xbf16>, vector<4x128xf32> -> vector<4x128xf32>
    %c0_3 = arith.constant 0 : index
    %c0_4 = arith.constant 0 : index
    %4 = vector.load %arg4[%c0_3, %c0_4] : memref<1x128xf32, #tpu.memory_space<vmem>>, vector<1x128xf32>
    %5 = vector.broadcast %4 : vector<1x128xf32> to vector<4x128xf32>
    %6 = arith.addf %3, %5 : vector<4x128xf32>
    %cst_5 = arith.constant 0.000000e+00 : f32
    %7 = vector.broadcast %cst_5 : f32 to vector<4x128xf32>
    %8 = arith.maximumf %6, %7 : vector<4x128xf32>
    %9 = arith.truncf %8 : vector<4x128xf32> to vector<4x128xbf16>
    %c0_6 = arith.constant 0 : index
    %c0_7 = arith.constant 0 : index
    %10 = vector.load %arg5[%c0_6, %c0_7] : memref<128x128xbf16, #tpu.memory_space<vmem>>, vector<128x128xbf16>
    %cst_8 = arith.constant dense<0.000000e+00> : vector<4x128xf32>
    %11 = tpu.matmul %9, %10, %cst_8 {dimension_numbers = #tpu.dot_dimension_numbers<[1], [0], [0], [1], [0, 0, 1, 1], [], []>} : vector<4x128xbf16>, vector<128x128xbf16>, vector<4x128xf32> -> vector<4x128xf32>
    %c0_9 = arith.constant 0 : index
    %c0_10 = arith.constant 0 : index
    %12 = vector.load %arg6[%c0_9, %c0_10] : memref<1x128xf32, #tpu.memory_space<vmem>>, vector<1x128xf32>
    %13 = vector.broadcast %12 : vector<1x128xf32> to vector<4x128xf32>
    %14 = arith.addf %11, %13 : vector<4x128xf32>
    %cst_11 = arith.constant 0.000000e+00 : f32
    %15 = vector.broadcast %cst_11 : f32 to vector<4x128xf32>
    %16 = arith.maximumf %14, %15 : vector<4x128xf32>
    %17 = arith.truncf %16 : vector<4x128xf32> to vector<4x128xbf16>
    %c0_12 = arith.constant 0 : index
    %c0_13 = arith.constant 0 : index
    %18 = vector.load %arg7[%c0_12, %c0_13] : memref<128x128xbf16, #tpu.memory_space<vmem>>, vector<128x128xbf16>
    %cst_14 = arith.constant dense<0.000000e+00> : vector<4x128xf32>
    %19 = tpu.matmul %17, %18, %cst_14 {dimension_numbers = #tpu.dot_dimension_numbers<[1], [0], [0], [1], [0, 0, 1, 1], [], []>} : vector<4x128xbf16>, vector<128x128xbf16>, vector<4x128xf32> -> vector<4x128xf32>
    %c0_15 = arith.constant 0 : index
    %c0_16 = arith.constant 0 : index
    %20 = vector.load %arg8[%c0_15, %c0_16] : memref<1x128xf32, #tpu.memory_space<vmem>>, vector<1x128xf32>
    %21 = vector.broadcast %20 : vector<1x128xf32> to vector<4x128xf32>
    %22 = arith.addf %19, %21 : vector<4x128xf32>
    %cst_17 = arith.constant 0.000000e+00 : f32
    %23 = vector.broadcast %cst_17 : f32 to vector<4x128xf32>
    %24 = arith.maximumf %22, %23 : vector<4x128xf32>
    %25 = arith.truncf %24 : vector<4x128xf32> to vector<4x128xbf16>
    %c0_18 = arith.constant 0 : index
    %c0_19 = arith.constant 0 : index
    %26 = vector.load %arg9[%c0_18, %c0_19] : memref<128x72xbf16, #tpu.memory_space<vmem>>, vector<128x72xbf16>
    %cst_20 = arith.constant dense<0.000000e+00> : vector<4x72xf32>
    %27 = tpu.matmul %25, %26, %cst_20 {dimension_numbers = #tpu.dot_dimension_numbers<[1], [0], [0], [1], [0, 0, 1, 1], [], []>} : vector<4x128xbf16>, vector<128x72xbf16>, vector<4x72xf32> -> vector<4x72xf32>
    %c0_21 = arith.constant 0 : index
    %c0_22 = arith.constant 0 : index
    %28 = vector.load %arg10[%c0_21, %c0_22] : memref<1x72xf32, #tpu.memory_space<vmem>>, vector<1x72xf32>
    %29 = vector.broadcast %28 : vector<1x72xf32> to vector<4x72xf32>
    %30 = arith.addf %27, %29 : vector<4x72xf32>
    %c0_23 = arith.constant 0 : index
    %c0_24 = arith.constant 0 : index
    %31 = vector.load %arg2[%c0_23, %c0_24] : memref<1x72xf32, #tpu.memory_space<vmem>>, vector<1x72xf32>
    %cst_25 = arith.constant 0.000000e+00 : f32
    %32 = vector.broadcast %cst_25 : f32 to vector<1x72xf32>
    %33 = arith.cmpf one, %31, %32 : vector<1x72xf32>
    %c0_26 = arith.constant 0 : index
    %c0_27 = arith.constant 0 : index
    %34 = vector.load %arg1[%c0_26, %c0_27] : memref<4x72xf32, #tpu.memory_space<vmem>>, vector<4x72xf32>
    %35 = vector.shape_cast %33 : vector<1x72xi1> to vector<1x72xi1>
    %36 = vector.broadcast %35 : vector<1x72xi1> to vector<4x72xi1>
    %37 = arith.select %36, %34, %30 : vector<4x72xi1>, vector<4x72xf32>
    %c0_28 = arith.constant 0 : index
    %c0_29 = arith.constant 0 : index
    %38 = vector.load %arg11[%c0_28, %c0_29] : memref<4x72xf32, #tpu.memory_space<vmem>>, vector<4x72xf32>
    tpu.vector_store %arg11[%c0_28, %c0_29], %37 {strides = array<i32>} : memref<4x72xf32, #tpu.memory_space<vmem>>, vector<4x72xf32>,
    return
  }
  func.func @transform_0(%arg0: i32) -> (i32, i32) {
    %c0_i32 = arith.constant 0 : i32
    %c0_i32_0 = arith.constant 0 : i32
    return %arg0, %c0_i32 : i32, i32
  }
  func.func @transform_1(%arg0: i32) -> (i32, i32) {
    %c0_i32 = arith.constant 0 : i32
    %c0_i32_0 = arith.constant 0 : i32
    %c0_i32_1 = arith.constant 0 : i32
    return %c0_i32, %c0_i32_0 : i32, i32
  }
  func.func @transform_2(%arg0: i32) -> (i32, i32) {
    %c0_i32 = arith.constant 0 : i32
    %c0_i32_0 = arith.constant 0 : i32
    %c0_i32_1 = arith.constant 0 : i32
    return %c0_i32, %c0_i32_0 : i32, i32
  }
  func.func @transform_3(%arg0: i32) -> (i32, i32) {
    %c0_i32 = arith.constant 0 : i32
    %c0_i32_0 = arith.constant 0 : i32
    %c0_i32_1 = arith.constant 0 : i32
    return %c0_i32, %c0_i32_0 : i32, i32
  }
  func.func @transform_4(%arg0: i32) -> (i32, i32) {
    %c0_i32 = arith.constant 0 : i32
    %c0_i32_0 = arith.constant 0 : i32
    %c0_i32_1 = arith.constant 0 : i32
    return %c0_i32, %c0_i32_0 : i32, i32
  }
  func.func @transform_5(%arg0: i32) -> (i32, i32) {
    %c0_i32 = arith.constant 0 : i32
    %c0_i32_0 = arith.constant 0 : i32
    %c0_i32_1 = arith.constant 0 : i32
    return %c0_i32, %c0_i32_0 : i32, i32
  }
  func.func @transform_6(%arg0: i32) -> (i32, i32) {
    %c0_i32 = arith.constant 0 : i32
    %c0_i32_0 = arith.constant 0 : i32
    %c0_i32_1 = arith.constant 0 : i32
    return %c0_i32, %c0_i32_0 : i32, i32
  }
  func.func @transform_7(%arg0: i32) -> (i32, i32) {
    %c0_i32 = arith.constant 0 : i32
    %c0_i32_0 = arith.constant 0 : i32
    %c0_i32_1 = arith.constant 0 : i32
    return %c0_i32, %c0_i32_0 : i32, i32
  }
  func.func @transform_8(%arg0: i32) -> (i32, i32) {
    %c0_i32 = arith.constant 0 : i32
    %c0_i32_0 = arith.constant 0 : i32
    %c0_i32_1 = arith.constant 0 : i32
    return %c0_i32, %c0_i32_0 : i32, i32
  }
  func.func @transform_9(%arg0: i32) -> (i32, i32) {
    %c0_i32 = arith.constant 0 : i32
    %c0_i32_0 = arith.constant 0 : i32
    %c0_i32_1 = arith.constant 0 : i32
    return %c0_i32, %c0_i32_0 : i32, i32
  }
  func.func @transform_10(%arg0: i32) -> (i32, i32) {
    %c0_i32 = arith.constant 0 : i32
    %c0_i32_0 = arith.constant 0 : i32
    return %arg0, %c0_i32 : i32, i32
  }
}

</mosaic_0001>

<bundles_post_ra>
// kernel: tpu_custom_call.1
= control target key start
LH: loop header
LB: loop body
LE: loop exit
PB: predicated region body
PF: predicated region fallthrough
CT: control target
= control target key end

     0   :  { %15 = vsyncpa [#allocation3], 0  ;;  %s787_s0 = inlined_call_operand.hbm [shape: f32[4,72], index: 0, kind: input, shape index: {}]   ;;  %s788_s1 = inlined_call_operand.vmem [shape: f32[1,72], index: 1, kind: input, shape index: {}]   ;;  %s789_s2 = inlined_call_operand.vmem [shape: bf16[72,128], index: 2, kind: input, shape index: {}]   ;;  %s790_s3 = inlined_call_operand.vmem [shape: f32[1,128], index: 3, kind: input, shape index: {}]   ;;  %s791_s4 = inlined_call_operand.vmem [shape: bf16[128,128], index: 4, kind: input, shape index: {}]   ;;  %s792_s5 = inlined_call_operand.vmem [shape: f32[1,128], index: 5, kind: input, shape index: {}]   ;;  %s793_s6 = inlined_call_operand.hbm [shape: bf16[128,128], index: 6, kind: input, shape index: {}]   ;;  %s794_s7 = inlined_call_operand.vmem [shape: f32[1,128], index: 7, kind: input, shape index: {}]   ;;  %s795_s8 = inlined_call_operand.vmem [shape: bf16[128,72], index: 8, kind: input, shape index: {}]   ;;  %s796_s9 = inlined_call_operand.vmem [shape: f32[1,72], index: 9, kind: input, shape index: {}]   ;;  %s797_s10 = inlined_call_operand.hbm [shape: f32[4,72], index: 10, kind: output, shape index: {}]  }
   0x1   :  { %16 = vsyncpa [#allocation6], 0 }
   0x2   :  { %17 = vsyncpa [#allocation4], 0  ;;  %s23_s15 = sshll.u32 %s787_s0, 4  ;;  %s634_s16 = smov [#allocation2]   ;;  %s24_s15 = int_to_ptr.hbm [resolvable:$true] %s23_s15 }
   0x3   :  { %s25_s17 = sshll.u32 %s634_s16, 4  ;;  %s43_s20 = sshll.u32 %s793_s6, 4  ;;  %s26_s17 = int_to_ptr.vmem [resolvable:$true] %s25_s17  ;;  %s44_s20 = int_to_ptr.hbm [resolvable:$true] %s43_s20 }
   0x4   :  { %28 = dma.hbm_to_vmem [thread:$0]  %s24_s15, 64, %s26_s17, [#allocation3]  }
   0x5   :  { %s635_s21 = smov [#allocation5]   ;;  %s636_s23 = smov 64  }
   0x6   :  { %s45_s22 = sshll.u32 %s635_s21, 4  ;;  %s637_s24 = smov 4   ;;  %s46_s22 = int_to_ptr.vmem [resolvable:$true] %s45_s22 }
   0x7   :  { %51 = dma.hbm_to_vmem [thread:$0]  %s44_s20, 1024, %s46_s22, [#allocation6], %s636_s23, %s636_s23, %s637_s24  }
   0x8   :  { %628 = dma.done.wait [#allocation3], 64  }
   0x9   :  { %629 = vsyncadd [#allocation3], 4294967232 }
   0xa   :  { %630 = dma.done.wait [#allocation6], 1024  }
   0xb   :  { %631 = vsyncadd [#allocation6], 4294966272  ;;  %v77_v0 = vld [vmem:[%s789_s2 + $0x20] sm:$0xf]  ;;  %vm113_vm0 = vcmask 1043456   ;;  %v529_v2 = vld [vmem:[%s791_s4 + $0x38] sm:$0xff] }
   0xc   :  { %v99_v1 = vunpack.c.l.b16 %v77_v0  ;;  %200 = vmatpush.bf16.msra.mxu1 %v529_v2  ;;  %v528_v4 = vld [vmem:[%s791_s4 + $0x30] sm:$0xff]  ;;  %v521_v6 = vld [vmem:[%s789_s2 + $0x18] sm:$0xff]  ;;  %v527_v7 = vld [vmem:[%s791_s4 + $0x28] sm:$0xff]  ;;  %vm109_vm1 = vcmask 588800   ;;  %v638_v53 = vmov 0   ;;  %s639_s26 = smov [#allocation7]  }
   0xd   :  { %v520_v8 = vld [vmem:[%s789_s2 + $0x10] sm:$0xff]  ;;  %v526_v9 = vld [vmem:[%s791_s4 + $0x20] sm:$0xff]  ;;  %v519_v10 = vld [vmem:[%s789_s2 + $0x8] sm:$0xff]  ;;  %vm385_vm4 = vcmask 584704  }
   0xe   :  { %v104_v3 = vpack.c.b16 %v99_v1, %v99_v1  ;;  %v525_v11 = vld [vmem:[%s791_s4 + $0x18] sm:$0xff]  ;;  %v518_v12 = vld [vmem:[%s789_s2] sm:$0xff]  ;;  %v524_v14 = vld [vmem:[%s791_s4 + $0x10] sm:$0xff] }
   0xf   :  { %v731_v13 = vld [vmem:[#allocation2] sm:$0xf]  ;;  %v523_v16 = vld [vmem:[%s791_s4 + $0x8] sm:$0xff]  ;;  %v536_v19 = vld [vmem:[#allocation5 + $0x30] sm:$0xff] }
  0x10   :  { %v115_v5 = vsel %vm113_vm0, %v104_v3, 0  ;;  %201 = vmatpush.bf16.msra.mxu1 %v528_v4  ;;  %v68_v15 = vpack.c.bf16 %v731_v13, %v731_v13  ;;  %v522_v17 = vld [vmem:[%s791_s4] sm:$0xff]  ;;  %v535_v20 = vld [vmem:[#allocation5 + $0x28] sm:$0xff]  ;;  %v532_v23 = vld [vmem:[#allocation5 + $0x10] sm:$0xff]  ;;  %s394_s4 = sshll.u32 %s797_s10, 4  ;;  %s395_s4 = int_to_ptr.hbm [resolvable:$true] %s394_s4 }
  0x11   :  { %120 = vmatpush.bf16.msra.mxu0 %v115_v5  ;;  %v537_v18 = vld [vmem:[#allocation5 + $0x38] sm:$0xff]  ;;  %v534_v21 = vld [vmem:[#allocation5 + $0x20] sm:$0xff]  ;;  %v531_v30 = vld [vmem:[#allocation5 + $0x8] sm:$0xff] }
  0x12   :  { %283 = vmatpush.bf16.msra.mxu2 %v537_v18  ;;  %v533_v22 = vld [vmem:[#allocation5 + $0x18] sm:$0xff]  ;;  %v530_v31 = vld [vmem:[#allocation5] sm:$0xff]  ;;  %v544_v33 = vld [vmem:[%s795_s8 + $0x30] sm:$0xff] }
  0x13   :  { %v552_v24 = vld [vmem:[%s790_s3] ss:$0 sm:$0xff]  ;;  %v545_v32 = vld [vmem:[%s795_s8 + $0x38] sm:$0xff]  ;;  %v543_v34 = vld [vmem:[%s795_s8 + $0x28] sm:$0xff] }
  0x14   :  { %202 = vmatpush.bf16.msra.mxu1 %v527_v7  ;;  %366 = vmatpush.bf16.msra.mxu3 %v545_v32  ;;  %v542_v35 = vld [vmem:[%s795_s8 + $0x20] sm:$0xff]  ;;  %v541_v36 = vld [vmem:[%s795_s8 + $0x18] sm:$0xff]  ;;  %v540_v37 = vld [vmem:[%s795_s8 + $0x10] sm:$0xff] }
  0x15   :  { %121 = vmatpush.bf16.msra.mxu0 %v521_v6  ;;  %v553_v38 = vld [vmem:[%s792_s5] ss:$0 sm:$0xff]  ;;  %v539_v44 = vld [vmem:[%s795_s8 + $0x8] sm:$0xff] }
  0x16   :  { %284 = vmatpush.bf16.msra.mxu2 %v536_v19  ;;  %v538_v45 = vld [vmem:[%s795_s8] sm:$0xff] }
  0x17   :  { %v554_v46 = vld [vmem:[%s794_s7] ss:$0 sm:$0xff]  ;;  %s392_s7 = sshll.u32 %s639_s26, 4  ;;  %s393_s7 = int_to_ptr.vmem [resolvable:$true] %s392_s7 }
  0x18   :  { %203 = vmatpush.bf16.msra.mxu1 %v526_v9  ;;  %367 = vmatpush.bf16.msra.mxu3 %v544_v33  ;;  %v379_v52 = vld [vmem:[%s788_s1] sm:$0x1] }
  0x19   :  { %122 = vmatpush.bf16.msra.mxu0 %v520_v8  ;;  %vm380_vm2 = vcmp.ne.f32.partialorder %v379_v52, 0.0  ;;  %v555_v56 = vld [vmem:[%s796_s9] ss:$0 sm:$0xff] }
  0x1a   :  { %285 = vmatpush.bf16.msra.mxu2 %v535_v20  ;;  %v381_v54 = vsel %vm380_vm2, 1, %v638_v53 }
  0x1b   :  { %v382_v55 = vperm.slane %v381_v54, 0 }
  0x1c   :  { %204 = vmatpush.bf16.msra.mxu1 %v525_v11  ;;  %368 = vmatpush.bf16.msra.mxu3 %v543_v34 }
  0x1d   :  { %123 = vmatpush.bf16.msra.mxu0 %v519_v10  ;;  %vm383_vm3 = vcmp.eq.s32.totalorder %v382_v55, 1 }
  0x1e   :  { %286 = vmatpush.bf16.msra.mxu2 %v534_v21 }
  0x20   :  { %205 = vmatpush.bf16.msra.mxu1 %v524_v14  ;;  %369 = vmatpush.bf16.msra.mxu3 %v542_v35 }
  0x21   :  { %124 = vmatpush.bf16.msra.mxu0 %v518_v12 }
  0x22   :  { %287 = vmatpush.bf16.msra.mxu2 %v533_v22 }
  0x24   :  { %421 = vmatmul.msk.bf16.vlgmr.msra.gmra.mxu0 %vm109_vm1, %v68_v15  ;;  %206 = vmatpush.bf16.msra.mxu1 %v523_v16 }
  0x25   :  { %370 = vmatpush.bf16.msra.mxu3 %v541_v36 }
  0x26   :  { %288 = vmatpush.bf16.msra.mxu2 %v532_v23 }
  0x28   :  { %207 = vmatpush.bf16.msra.mxu1 %v522_v17 }
  0x29   :  { %371 = vmatpush.bf16.msra.mxu3 %v540_v37 }
  0x2a   :  { %289 = vmatpush.bf16.msra.mxu2 %v531_v30 }
  0x2d   :  { %372 = vmatpush.bf16.msra.mxu3 %v539_v44 }
  0x2e   :  { %290 = vmatpush.bf16.msra.mxu2 %v530_v31 }
  0x31   :  { %373 = vmatpush.bf16.msra.mxu3 %v538_v45 }
  0xa1   :  { %v126_v25 = vpop.f32.mrf.mxu0 }
  0xa2   :  { %v127_v26 = vadd.f32 %v552_v24, %v126_v25 }
  0xa4   :  { %v130_v27 = vmax.f32 %v127_v26, 0.0 }
  0xa6   :  { %v131_v28 = vpack.c.bf16 %v130_v27, %v130_v27 }
  0xa8   :  { %208 = vmatmul.bf16.vlgmr.msra.gmra.mxu1 %v131_v28 }
  0xa9   :  { %v128_v29 = vpop.f32.mrf.mxu0 }
 0x125   :  { %v209_v39 = vpop.f32.mrf.mxu1 }
 0x126   :  { %v210_v40 = vadd.f32 %v553_v38, %v209_v39 }
 0x128   :  { %v213_v41 = vmax.f32 %v210_v40, 0.0 }
 0x12a   :  { %v214_v42 = vpack.c.bf16 %v213_v41, %v213_v41 }
 0x12c   :  { %291 = vmatmul.bf16.vlgmr.msra.gmra.mxu2 %v214_v42 }
 0x12d   :  { %v211_v43 = vpop.f32.mrf.mxu1 }
 0x1af   :  { %v292_v47 = vpop.f32.mrf.mxu2 }
 0x1b0   :  { %v293_v48 = vadd.f32 %v554_v46, %v292_v47 }
 0x1b2   :  { %v296_v49 = vmax.f32 %v293_v48, 0.0 }
 0x1b4   :  { %v297_v50 = vpack.c.bf16 %v296_v49, %v296_v49 }
 0x1b6   :  { %374 = vmatmul.bf16.vlgmr.msra.gmra.mxu3 %v297_v50 }
 0x1b7   :  { %v294_v51 = vpop.f32.mrf.mxu2 }
 0x239   :  { %v375_v57 = vpop.f32.mrf.mxu3 }
 0x23a   :  { %v376_v58 = vadd.f32 %v555_v56, %v375_v57 }
 0x23c   :  { %v384_v59 = vsel %vm383_vm3, %v731_v13, %v376_v58 }
 0x23d   :  { %386 = vst.msk [vmem:[#allocation7] sm:$0xf] %vm385_vm4, %v384_v59 }
 0x23e   :  { %397 = dma.vmem_to_hbm [thread:$0]  %s393_s7, 64, %s395_s4, [#allocation4]  }
 0x241   :  { %v377_v60 = vpop.f32.mrf.mxu3 }
 0x242   :  { %632 = dma.done.wait [#allocation4], 64  }
 0x243   :  { %633 = vsyncadd [#allocation4], 4294967232 }
 0x244   :  { %402 = vsyncpa [#allocation3], 1 }
 0x245   :  { %403 = vsyncpa [#allocation6], 1 }
 0x246   :  { %404 = vsyncpa [#allocation4], 1 }

</bundles_post_ra>
